<compile_context>
chip_gen: v7x
topology: tpu7x:2x2x1
jax: 0.10.0
libtpu: 0.0.40
codegen_flags: <defaults>
</compile_context>

<pallas_src>
import jax
import jax.numpy as jnp
from jax.experimental import pallas as pl
from jax.experimental.pallas import tpu as pltpu

# Small, module-consistent, lane-friendly shapes.
B, S, H = 2, 8, 128         # batch, sequence length, hidden_size
REL = 2 * H                 # relation_representation_size = 2 * hidden_size = 256
NUM_TAGS = 5                # len(relation_tags)
VOCAB = 32

B_PAD = 8                   # pad pair/M dimension to the vreg sublane count
TAGS_PAD = 128              # lane-dense logits slab (pad NUM_TAGS -> 128 lanes)
assert B < B_PAD            # the last slab row carries the packed loss scalar


def _relation_head_kernel(head_ref, tail_ref,               # scalar prefetch (SMEM)
                          seq_hbm, labels_ref,               # ANY (HBM) + VMEM inputs
                          w1_top_ref, w1_bot_ref, b1_ref, w2_ref, b2_ref,
                          out_ref,                            # (B_PAD, TAGS_PAD) slab
                          e1_stack, e2_stack, sem):           # VMEM scratch + DMA sems
    # Zero only the padded pair rows; the real rows are fully overwritten by DMAs.
    e1_stack[pl.ds(B, B_PAD - B), :] = jnp.zeros((B_PAD - B, H), jnp.float32)
    e2_stack[pl.ds(B, B_PAD - B), :] = jnp.zeros((B_PAD - B, H), jnp.float32)

    # Row gather: sequence_output[p, head[p], :] / sequence_output[p, tail[p], :].
    # Issue all 2*B row DMAs up front (they fly concurrently), then wait once.
    # All SMEM scalar reads happen before any .wait() (keeps sst->sld forwarding).
    copies = []
    for p in range(B):                                   # tiny static unroll
        e1_row = p * S + head_ref[p]
        e2_row = p * S + tail_ref[p]
        c1 = pltpu.make_async_copy(seq_hbm.at[pl.ds(e1_row, 1), :],
                                   e1_stack.at[pl.ds(p, 1), :], sem.at[0, p])
        c2 = pltpu.make_async_copy(seq_hbm.at[pl.ds(e2_row, 1), :],
                                   e2_stack.at[pl.ds(p, 1), :], sem.at[1, p])
        c1.start()
        c2.start()
        copies += [c1, c2]
    for c in copies:
        c.wait()

    # post_transformer: split-weight Linear(2H -> 2H) + ReLU.
    #   h = e1 @ w1[:H, :] + e2 @ w1[H:, :] + b1   (== concat(e1, e2) @ w1 + b1,
    # without an XLU lane-axis concat).  bf16 MXU inputs, f32 accumulation.
    h = (jnp.dot(e1_stack[...].astype(jnp.bfloat16), w1_top_ref[...],
                 preferred_element_type=jnp.float32)
         + jnp.dot(e2_stack[...].astype(jnp.bfloat16), w1_bot_ref[...],
                   preferred_element_type=jnp.float32)
         + b1_ref[...])
    h = jnp.maximum(h, 0.0)

    # classifier: Linear(2H -> num_tags), lane-dense padded to 128 lanes.
    logits = (jnp.dot(h.astype(jnp.bfloat16), w2_ref[...],
                      preferred_element_type=jnp.float32)
              + b2_ref[...])

    # CrossEntropyLoss (mean over the B real rows); padded lanes/rows masked.
    lane = jax.lax.broadcasted_iota(jnp.int32, (B_PAD, TAGS_PAD), 1)
    lane_valid = lane < NUM_TAGS
    masked = jnp.where(lane_valid, logits, jnp.float32(-1e30))
    m = jnp.max(masked, axis=-1, keepdims=True)                        # (B_PAD, 1)
    lse = m + jnp.log(jnp.sum(jnp.exp(masked - m), axis=-1, keepdims=True))
    one_hot = (lane == labels_ref[...]).astype(jnp.float32)            # (B_PAD, 128)
    picked = jnp.sum(logits * one_hot, axis=-1, keepdims=True)         # (B_PAD, 1)
    row_ids = jax.lax.broadcasted_iota(jnp.int32, (B_PAD, 1), 0)
    per_row = jnp.where(row_ids < B, lse - picked, 0.0)
    loss = jnp.sum(per_row) * (1.0 / B)

    # One lane-dense slab output: rows [0, B) hold logits, the last (padding) row
    # carries the loss scalar broadcast across its lanes.
    out_ref[...] = logits                                               # unmasked vst
    out_ref[pl.ds(B_PAD - 1, 1), :] = jnp.broadcast_to(loss, (1, TAGS_PAD))


def prepare_relation_head_params(w1, b1, w2, b2):
    """One-time weight preprocessing — hoisted out of the per-call hot path."""
    w1_bf = w1.astype(jnp.bfloat16)
    w1_top = w1_bf[:H, :]                                    # (H, REL)
    w1_bot = w1_bf[H:, :]                                    # (H, REL)
    w2_pad = jnp.zeros((REL, TAGS_PAD), jnp.bfloat16).at[:, :NUM_TAGS].set(
        w2.astype(jnp.bfloat16))
    b2_pad = jnp.zeros((1, TAGS_PAD), jnp.float32).at[:, :NUM_TAGS].set(
        b2.reshape(1, NUM_TAGS).astype(jnp.float32))
    b1_row = b1.reshape(1, REL).astype(jnp.float32)
    return w1_top, w1_bot, b1_row, w2_pad, b2_pad


@jax.jit
def relation_extraction_head(sequence_output, head_index, tail_index, labels,
                             w1_top, w1_bot, b1, w2_pad, b2_pad):
    """Pallas-accelerated relation head. Returns (logits [B, NUM_TAGS], loss scalar)."""
    # Flat (B*S, H) view so the row gather is a plain row-index DMA.
    seq2d = sequence_output.reshape(B * S, H)
    # Labels ride in as a tiny (B_PAD, 1) int32 VMEM block (pure vreg one-hot compare).
    labels_pad = jnp.zeros((B_PAD, 1), jnp.int32).at[:B, 0].set(labels)

    grid_spec = pltpu.PrefetchScalarGridSpec(
        num_scalar_prefetch=2,          # head_index, tail_index -> SMEM for DMA addrs
        grid=(1,),                      # single step: straight-line kernel body
        in_specs=[
            pl.BlockSpec(memory_space=pl.ANY),                          # seq rows (HBM)
            pl.BlockSpec((B_PAD, 1), lambda i, hd, tl: (0, 0)),         # labels
            pl.BlockSpec((H, REL), lambda i, hd, tl: (0, 0)),           # w1[:H]
            pl.BlockSpec((H, REL), lambda i, hd, tl: (0, 0)),           # w1[H:]
            pl.BlockSpec((1, REL), lambda i, hd, tl: (0, 0)),           # b1
            pl.BlockSpec((REL, TAGS_PAD), lambda i, hd, tl: (0, 0)),    # w2 padded
            pl.BlockSpec((1, TAGS_PAD), lambda i, hd, tl: (0, 0)),      # b2 padded
        ],
        out_specs=pl.BlockSpec((B_PAD, TAGS_PAD), lambda i, hd, tl: (0, 0)),
        scratch_shapes=[pltpu.VMEM((B_PAD, H), jnp.float32),            # e1 stack
                        pltpu.VMEM((B_PAD, H), jnp.float32),            # e2 stack
                        pltpu.SemaphoreType.DMA((2, B))],               # gather sems
    )

    slab = pl.pallas_call(
        _relation_head_kernel,
        out_shape=jax.ShapeDtypeStruct((B_PAD, TAGS_PAD), jnp.float32),
        grid_spec=grid_spec,
        compiler_params=pltpu.CompilerParams(dimension_semantics=("arbitrary",)),
    )(head_index, tail_index, seq2d, labels_pad, w1_top, w1_bot, b1, w2_pad, b2_pad)

    logits = slab[:B, :NUM_TAGS]
    loss = slab[B_PAD - 1, 0]
    return logits, loss


def feature_extractor_stub(input_ids, attention_mask, global_attention_mask, emb_table):
    # Deterministic stand-in for the transformer feature extractor (plain-JAX glue).
    seq = emb_table[input_ids] * attention_mask[..., None].astype(jnp.float32)
    seq = seq + 0.01 * global_attention_mask[..., None].astype(jnp.float32)
    return seq  # [B, S, H] = last_hidden_state


def reference_head(sequence_output, head_index, tail_index, labels, w1, b1, w2, b2):
    # Mirrors the kernel's precision choice (bf16 matmul inputs, f32 accumulation).
    e1 = sequence_output[jnp.arange(B), head_index]
    e2 = sequence_output[jnp.arange(B), tail_index]
    feats = jnp.concatenate([e1, e2], axis=1)
    h = jnp.dot(feats.astype(jnp.bfloat16), w1.astype(jnp.bfloat16),
                preferred_element_type=jnp.float32) + b1
    h = jnp.maximum(h, 0.0)
    logits = jnp.dot(h.astype(jnp.bfloat16), w2.astype(jnp.bfloat16),
                     preferred_element_type=jnp.float32) + b2
    logp = jax.nn.log_softmax(logits, axis=-1)
    loss = -jnp.mean(logp[jnp.arange(B), labels])
    return logits, loss


if __name__ == "__main__":
    key = jax.random.PRNGKey(0)
    k_ids, k_emb, k_w1, k_b1, k_w2, k_b2 = jax.random.split(key, 6)

    # Deterministic synthetic inputs.
    input_ids = jax.random.randint(k_ids, (B, S), 0, VOCAB, dtype=jnp.int32)
    attention_mask = jnp.ones((B, S), dtype=jnp.int32)
    global_attention_mask = jnp.zeros((B, S), dtype=jnp.int32).at[:, 0].set(1)
    head_index = jnp.array([1, 3], dtype=jnp.int32)
    tail_index = jnp.array([5, 2], dtype=jnp.int32)
    labels = jnp.array([2, 0], dtype=jnp.int32)

    # Deterministic parameters (shapes per __init__; weights stored as [in, out]).
    emb_table = 0.1 * jax.random.normal(k_emb, (VOCAB, H), dtype=jnp.float32)
    w1 = 0.05 * jax.random.normal(k_w1, (REL, REL), dtype=jnp.float32)
    b1 = 0.05 * jax.random.normal(k_b1, (1, REL), dtype=jnp.float32)
    w2 = 0.05 * jax.random.normal(k_w2, (REL, NUM_TAGS), dtype=jnp.float32)
    b2 = 0.05 * jax.random.normal(k_b2, (1, NUM_TAGS), dtype=jnp.float32)

    # forward: features = feature_extractor(...).last_hidden_state
    sequence_output = feature_extractor_stub(
        input_ids, attention_mask, global_attention_mask, emb_table)

    # One-time weight preprocessing (off the hot path), then the Pallas head.
    head_params = prepare_relation_head_params(w1, b1, w2, b2)
    logits, loss = relation_extraction_head(
        sequence_output, head_index, tail_index, labels, *head_params)
    jax.block_until_ready((logits, loss))

    ref_logits, ref_loss = reference_head(
        sequence_output, head_index, tail_index, labels, w1, b1[0], w2, b2[0])
    assert jnp.allclose(logits, ref_logits, atol=1e-3, rtol=1e-3), "logits mismatch"
    assert jnp.allclose(loss, ref_loss, atol=1e-3, rtol=1e-3), "loss mismatch"

    print("KERNEL_OK")
</pallas_src>

<mosaic_0001>
module attributes {stable_mosaic.version = 11 : i64} {
  func.func @_relation_head_kernel(%arg0: i32, %arg1: memref<2xi32, #tpu.memory_space<smem>>, %arg2: memref<2xi32, #tpu.memory_space<smem>>, %arg3: memref<16x128xf32, #tpu.memory_space<any>>, %arg4: memref<8x1xi32, #tpu.memory_space<vmem>>, %arg5: memref<128x256xbf16, #tpu.memory_space<vmem>>, %arg6: memref<128x256xbf16, #tpu.memory_space<vmem>>, %arg7: memref<1x256xf32, #tpu.memory_space<vmem>>, %arg8: memref<256x128xbf16, #tpu.memory_space<vmem>>, %arg9: memref<1x128xf32, #tpu.memory_space<vmem>>, %arg10: memref<8x128xf32, #tpu.memory_space<vmem>>, %arg11: memref<8x128xf32, #tpu.memory_space<vmem>>, %arg12: memref<8x128xf32, #tpu.memory_space<vmem>>, %arg13: memref<2x2x!tpu.dma_semaphore, #tpu.memory_space<semaphore_mem>>) attributes {dimension_semantics = [#tpu.dimension_semantics<arbitrary>], iteration_bounds = array<i64: 1>, scalar_prefetch = 2 : i64, scratch_operands = 3 : i64, tpu.core_type = #tpu.core_type<tc>, window_params = [{}, {pipeline_mode = #tpu.pipeline_mode<synchronous>, transform_indices = @transform_1, window_bounds = array<i64: 8, 1>}, {pipeline_mode = #tpu.pipeline_mode<synchronous>, transform_indices = @transform_2, window_bounds = array<i64: 128, 256>}, {pipeline_mode = #tpu.pipeline_mode<synchronous>, transform_indices = @transform_3, window_bounds = array<i64: 128, 256>}, {pipeline_mode = #tpu.pipeline_mode<synchronous>, transform_indices = @transform_4, window_bounds = array<i64: 1, 256>}, {pipeline_mode = #tpu.pipeline_mode<synchronous>, transform_indices = @transform_5, window_bounds = array<i64: 256, 128>}, {pipeline_mode = #tpu.pipeline_mode<synchronous>, transform_indices = @transform_6, window_bounds = array<i64: 1, 128>}, {pipeline_mode = #tpu.pipeline_mode<synchronous>, transform_indices = @transform_7, window_bounds = array<i64: 8, 128>}]} {
    %cst = arith.constant 0.000000e+00 : f32
    %0 = vector.broadcast %cst : f32 to vector<6x128xf32>
    %c2 = arith.constant 2 : index
    %c0 = arith.constant 0 : index
    %1 = vector.load %arg11[%c2, %c0] : memref<8x128xf32, #tpu.memory_space<vmem>>, vector<6x128xf32>
    tpu.vector_store %arg11[%c2, %c0], %0 {strides = array<i32>} : memref<8x128xf32, #tpu.memory_space<vmem>>, vector<6x128xf32>,
    %cst_0 = arith.constant 0.000000e+00 : f32
    %2 = vector.broadcast %cst_0 : f32 to vector<6x128xf32>
    %c2_1 = arith.constant 2 : index
    %c0_2 = arith.constant 0 : index
    %3 = vector.load %arg12[%c2_1, %c0_2] : memref<8x128xf32, #tpu.memory_space<vmem>>, vector<6x128xf32>
    tpu.vector_store %arg12[%c2_1, %c0_2], %2 {strides = array<i32>} : memref<8x128xf32, #tpu.memory_space<vmem>>, vector<6x128xf32>,
    %c0_3 = arith.constant 0 : index
    %4 = memref.load %arg1[%c0_3] : memref<2xi32, #tpu.memory_space<smem>>
    %c0_i32 = arith.constant 0 : i32
    %5 = arith.addi %c0_i32, %4 : i32
    %c0_4 = arith.constant 0 : index
    %6 = memref.load %arg2[%c0_4] : memref<2xi32, #tpu.memory_space<smem>>
    %c0_i32_5 = arith.constant 0 : i32
    %7 = arith.addi %c0_i32_5, %6 : i32
    %c0_i32_6 = arith.constant 0 : i32
    %c0_i32_7 = arith.constant 0 : i32
    %c0_i32_8 = arith.constant 0 : i32
    %8 = tpu.memref_slice %arg3[%5, %c0_i32_8] : memref<16x128xf32, #tpu.memory_space<any>> -> memref<1x128xf32, #tpu.memory_space<any>>
    %c0_i32_9 = arith.constant 0 : i32
    %c0_i32_10 = arith.constant 0 : i32
    %9 = tpu.memref_slice %arg11[%c0_i32_9, %c0_i32_10] : memref<8x128xf32, #tpu.memory_space<vmem>> -> memref<1x128xf32, #tpu.memory_space<vmem>>
    %10 = tpu.memref_slice %arg13[%c0_i32_6, %c0_i32_7] : memref<2x2x!tpu.dma_semaphore, #tpu.memory_space<semaphore_mem>> -> memref<1x1x!tpu.dma_semaphore, #tpu.memory_space<semaphore_mem>>
    %11 = tpu.memref_squeeze %10 : memref<1x1x!tpu.dma_semaphore, #tpu.memory_space<semaphore_mem>> -> memref<!tpu.dma_semaphore, #tpu.memory_space<semaphore_mem>>
    tpu.enqueue_dma source(%8 : memref<1x128xf32, #tpu.memory_space<any>>) target(%9 : memref<1x128xf32, #tpu.memory_space<vmem>>) target_semaphore(%11 : memref<!tpu.dma_semaphore, #tpu.memory_space<semaphore_mem>>)
    %c1_i32 = arith.constant 1 : i32
    %c0_i32_11 = arith.constant 0 : i32
    %c0_i32_12 = arith.constant 0 : i32
    %12 = tpu.memref_slice %arg3[%7, %c0_i32_12] : memref<16x128xf32, #tpu.memory_space<any>> -> memref<1x128xf32, #tpu.memory_space<any>>
    %c0_i32_13 = arith.constant 0 : i32
    %c0_i32_14 = arith.constant 0 : i32
    %13 = tpu.memref_slice %arg12[%c0_i32_13, %c0_i32_14] : memref<8x128xf32, #tpu.memory_space<vmem>> -> memref<1x128xf32, #tpu.memory_space<vmem>>
    %14 = tpu.memref_slice %arg13[%c1_i32, %c0_i32_11] : memref<2x2x!tpu.dma_semaphore, #tpu.memory_space<semaphore_mem>> -> memref<1x1x!tpu.dma_semaphore, #tpu.memory_space<semaphore_mem>>
    %15 = tpu.memref_squeeze %14 : memref<1x1x!tpu.dma_semaphore, #tpu.memory_space<semaphore_mem>> -> memref<!tpu.dma_semaphore, #tpu.memory_space<semaphore_mem>>
    tpu.enqueue_dma source(%12 : memref<1x128xf32, #tpu.memory_space<any>>) target(%13 : memref<1x128xf32, #tpu.memory_space<vmem>>) target_semaphore(%15 : memref<!tpu.dma_semaphore, #tpu.memory_space<semaphore_mem>>)
    %c1 = arith.constant 1 : index
    %16 = memref.load %arg1[%c1] : memref<2xi32, #tpu.memory_space<smem>>
    %c8_i32 = arith.constant 8 : i32
    %17 = arith.addi %c8_i32, %16 : i32
    %c1_15 = arith.constant 1 : index
    %18 = memref.load %arg2[%c1_15] : memref<2xi32, #tpu.memory_space<smem>>
    %c8_i32_16 = arith.constant 8 : i32
    %19 = arith.addi %c8_i32_16, %18 : i32
    %c0_i32_17 = arith.constant 0 : i32
    %c1_i32_18 = arith.constant 1 : i32
    %c0_i32_19 = arith.constant 0 : i32
    %20 = tpu.memref_slice %arg3[%17, %c0_i32_19] : memref<16x128xf32, #tpu.memory_space<any>> -> memref<1x128xf32, #tpu.memory_space<any>>
    %c1_i32_20 = arith.constant 1 : i32
    %c0_i32_21 = arith.constant 0 : i32
    %21 = tpu.memref_slice %arg11[%c1_i32_20, %c0_i32_21] : memref<8x128xf32, #tpu.memory_space<vmem>> -> memref<1x128xf32, #tpu.memory_space<vmem>>
    %22 = tpu.memref_slice %arg13[%c0_i32_17, %c1_i32_18] : memref<2x2x!tpu.dma_semaphore, #tpu.memory_space<semaphore_mem>> -> memref<1x1x!tpu.dma_semaphore, #tpu.memory_space<semaphore_mem>>
    %23 = tpu.memref_squeeze %22 : memref<1x1x!tpu.dma_semaphore, #tpu.memory_space<semaphore_mem>> -> memref<!tpu.dma_semaphore, #tpu.memory_space<semaphore_mem>>
    tpu.enqueue_dma source(%20 : memref<1x128xf32, #tpu.memory_space<any>>) target(%21 : memref<1x128xf32, #tpu.memory_space<vmem>>) target_semaphore(%23 : memref<!tpu.dma_semaphore, #tpu.memory_space<semaphore_mem>>)
    %c1_i32_22 = arith.constant 1 : i32
    %c1_i32_23 = arith.constant 1 : i32
    %c0_i32_24 = arith.constant 0 : i32
    %24 = tpu.memref_slice %arg3[%19, %c0_i32_24] : memref<16x128xf32, #tpu.memory_space<any>> -> memref<1x128xf32, #tpu.memory_space<any>>
    %c1_i32_25 = arith.constant 1 : i32
    %c0_i32_26 = arith.constant 0 : i32
    %25 = tpu.memref_slice %arg12[%c1_i32_25, %c0_i32_26] : memref<8x128xf32, #tpu.memory_space<vmem>> -> memref<1x128xf32, #tpu.memory_space<vmem>>
    %26 = tpu.memref_slice %arg13[%c1_i32_22, %c1_i32_23] : memref<2x2x!tpu.dma_semaphore, #tpu.memory_space<semaphore_mem>> -> memref<1x1x!tpu.dma_semaphore, #tpu.memory_space<semaphore_mem>>
    %27 = tpu.memref_squeeze %26 : memref<1x1x!tpu.dma_semaphore, #tpu.memory_space<semaphore_mem>> -> memref<!tpu.dma_semaphore, #tpu.memory_space<semaphore_mem>>
    tpu.enqueue_dma source(%24 : memref<1x128xf32, #tpu.memory_space<any>>) target(%25 : memref<1x128xf32, #tpu.memory_space<vmem>>) target_semaphore(%27 : memref<!tpu.dma_semaphore, #tpu.memory_space<semaphore_mem>>)
    %c0_i32_27 = arith.constant 0 : i32
    %c0_i32_28 = arith.constant 0 : i32
    %c0_i32_29 = arith.constant 0 : i32
    %28 = tpu.memref_slice %arg3[%5, %c0_i32_29] : memref<16x128xf32, #tpu.memory_space<any>> -> memref<1x128xf32, #tpu.memory_space<any>>
    %c0_i32_30 = arith.constant 0 : i32
    %c0_i32_31 = arith.constant 0 : i32
    %29 = tpu.memref_slice %arg11[%c0_i32_30, %c0_i32_31] : memref<8x128xf32, #tpu.memory_space<vmem>> -> memref<1x128xf32, #tpu.memory_space<vmem>>
    %30 = tpu.memref_slice %arg13[%c0_i32_27, %c0_i32_28] : memref<2x2x!tpu.dma_semaphore, #tpu.memory_space<semaphore_mem>> -> memref<1x1x!tpu.dma_semaphore, #tpu.memory_space<semaphore_mem>>
    %31 = tpu.memref_squeeze %30 : memref<1x1x!tpu.dma_semaphore, #tpu.memory_space<semaphore_mem>> -> memref<!tpu.dma_semaphore, #tpu.memory_space<semaphore_mem>>
    tpu.wait_dma2 semaphore(%31 : memref<!tpu.dma_semaphore, #tpu.memory_space<semaphore_mem>>) src(%28 : memref<1x128xf32, #tpu.memory_space<any>>) dst(%29 : memref<1x128xf32, #tpu.memory_space<vmem>>)
    %c1_i32_32 = arith.constant 1 : i32
    %c0_i32_33 = arith.constant 0 : i32
    %c0_i32_34 = arith.constant 0 : i32
    %32 = tpu.memref_slice %arg3[%7, %c0_i32_34] : memref<16x128xf32, #tpu.memory_space<any>> -> memref<1x128xf32, #tpu.memory_space<any>>
    %c0_i32_35 = arith.constant 0 : i32
    %c0_i32_36 = arith.constant 0 : i32
    %33 = tpu.memref_slice %arg12[%c0_i32_35, %c0_i32_36] : memref<8x128xf32, #tpu.memory_space<vmem>> -> memref<1x128xf32, #tpu.memory_space<vmem>>
    %34 = tpu.memref_slice %arg13[%c1_i32_32, %c0_i32_33] : memref<2x2x!tpu.dma_semaphore, #tpu.memory_space<semaphore_mem>> -> memref<1x1x!tpu.dma_semaphore, #tpu.memory_space<semaphore_mem>>
    %35 = tpu.memref_squeeze %34 : memref<1x1x!tpu.dma_semaphore, #tpu.memory_space<semaphore_mem>> -> memref<!tpu.dma_semaphore, #tpu.memory_space<semaphore_mem>>
    tpu.wait_dma2 semaphore(%35 : memref<!tpu.dma_semaphore, #tpu.memory_space<semaphore_mem>>) src(%32 : memref<1x128xf32, #tpu.memory_space<any>>) dst(%33 : memref<1x128xf32, #tpu.memory_space<vmem>>)
    %c0_i32_37 = arith.constant 0 : i32
    %c1_i32_38 = arith.constant 1 : i32
    %c0_i32_39 = arith.constant 0 : i32
    %36 = tpu.memref_slice %arg3[%17, %c0_i32_39] : memref<16x128xf32, #tpu.memory_space<any>> -> memref<1x128xf32, #tpu.memory_space<any>>
    %c1_i32_40 = arith.constant 1 : i32
    %c0_i32_41 = arith.constant 0 : i32
    %37 = tpu.memref_slice %arg11[%c1_i32_40, %c0_i32_41] : memref<8x128xf32, #tpu.memory_space<vmem>> -> memref<1x128xf32, #tpu.memory_space<vmem>>
    %38 = tpu.memref_slice %arg13[%c0_i32_37, %c1_i32_38] : memref<2x2x!tpu.dma_semaphore, #tpu.memory_space<semaphore_mem>> -> memref<1x1x!tpu.dma_semaphore, #tpu.memory_space<semaphore_mem>>
    %39 = tpu.memref_squeeze %38 : memref<1x1x!tpu.dma_semaphore, #tpu.memory_space<semaphore_mem>> -> memref<!tpu.dma_semaphore, #tpu.memory_space<semaphore_mem>>
    tpu.wait_dma2 semaphore(%39 : memref<!tpu.dma_semaphore, #tpu.memory_space<semaphore_mem>>) src(%36 : memref<1x128xf32, #tpu.memory_space<any>>) dst(%37 : memref<1x128xf32, #tpu.memory_space<vmem>>)
    %c1_i32_42 = arith.constant 1 : i32
    %c1_i32_43 = arith.constant 1 : i32
    %c0_i32_44 = arith.constant 0 : i32
    %40 = tpu.memref_slice %arg3[%19, %c0_i32_44] : memref<16x128xf32, #tpu.memory_space<any>> -> memref<1x128xf32, #tpu.memory_space<any>>
    %c1_i32_45 = arith.constant 1 : i32
    %c0_i32_46 = arith.constant 0 : i32
    %41 = tpu.memref_slice %arg12[%c1_i32_45, %c0_i32_46] : memref<8x128xf32, #tpu.memory_space<vmem>> -> memref<1x128xf32, #tpu.memory_space<vmem>>
    %42 = tpu.memref_slice %arg13[%c1_i32_42, %c1_i32_43] : memref<2x2x!tpu.dma_semaphore, #tpu.memory_space<semaphore_mem>> -> memref<1x1x!tpu.dma_semaphore, #tpu.memory_space<semaphore_mem>>
    %43 = tpu.memref_squeeze %42 : memref<1x1x!tpu.dma_semaphore, #tpu.memory_space<semaphore_mem>> -> memref<!tpu.dma_semaphore, #tpu.memory_space<semaphore_mem>>
    tpu.wait_dma2 semaphore(%43 : memref<!tpu.dma_semaphore, #tpu.memory_space<semaphore_mem>>) src(%40 : memref<1x128xf32, #tpu.memory_space<any>>) dst(%41 : memref<1x128xf32, #tpu.memory_space<vmem>>)
    %c0_47 = arith.constant 0 : index
    %c0_48 = arith.constant 0 : index
    %44 = vector.load %arg11[%c0_47, %c0_48] : memref<8x128xf32, #tpu.memory_space<vmem>>, vector<8x128xf32>
    %45 = arith.truncf %44 : vector<8x128xf32> to vector<8x128xbf16>
    %c0_49 = arith.constant 0 : index
    %c0_50 = arith.constant 0 : index
    %46 = vector.load %arg5[%c0_49, %c0_50] : memref<128x256xbf16, #tpu.memory_space<vmem>>, vector<128x256xbf16>
    %cst_51 = arith.constant dense<0.000000e+00> : vector<8x256xf32>
    %47 = tpu.matmul %45, %46, %cst_51 {dimension_numbers = #tpu.dot_dimension_numbers<[1], [0], [0], [1], [0, 0, 1, 1], [], []>} : vector<8x128xbf16>, vector<128x256xbf16>, vector<8x256xf32> -> vector<8x256xf32>
    %c0_52 = arith.constant 0 : index
    %c0_53 = arith.constant 0 : index
    %48 = vector.load %arg12[%c0_52, %c0_53] : memref<8x128xf32, #tpu.memory_space<vmem>>, vector<8x128xf32>
    %49 = arith.truncf %48 : vector<8x128xf32> to vector<8x128xbf16>
    %c0_54 = arith.constant 0 : index
    %c0_55 = arith.constant 0 : index
    %50 = vector.load %arg6[%c0_54, %c0_55] : memref<128x256xbf16, #tpu.memory_space<vmem>>, vector<128x256xbf16>
    %cst_56 = arith.constant dense<0.000000e+00> : vector<8x256xf32>
    %51 = tpu.matmul %49, %50, %cst_56 {dimension_numbers = #tpu.dot_dimension_numbers<[1], [0], [0], [1], [0, 0, 1, 1], [], []>} : vector<8x128xbf16>, vector<128x256xbf16>, vector<8x256xf32> -> vector<8x256xf32>
    %52 = arith.addf %47, %51 : vector<8x256xf32>
    %c0_57 = arith.constant 0 : index
    %c0_58 = arith.constant 0 : index
    %53 = vector.load %arg7[%c0_57, %c0_58] : memref<1x256xf32, #tpu.memory_space<vmem>>, vector<1x256xf32>
    %54 = vector.broadcast %53 : vector<1x256xf32> to vector<8x256xf32>
    %55 = arith.addf %52, %54 : vector<8x256xf32>
    %cst_59 = arith.constant 0.000000e+00 : f32
    %56 = vector.broadcast %cst_59 : f32 to vector<8x256xf32>
    %57 = arith.maximumf %55, %56 : vector<8x256xf32>
    %58 = arith.truncf %57 : vector<8x256xf32> to vector<8x256xbf16>
    %c0_60 = arith.constant 0 : index
    %c0_61 = arith.constant 0 : index
    %59 = vector.load %arg8[%c0_60, %c0_61] : memref<256x128xbf16, #tpu.memory_space<vmem>>, vector<256x128xbf16>
    %cst_62 = arith.constant dense<0.000000e+00> : vector<8x128xf32>
    %60 = tpu.matmul %58, %59, %cst_62 {dimension_numbers = #tpu.dot_dimension_numbers<[1], [0], [0], [1], [0, 0, 1, 1], [], []>} : vector<8x256xbf16>, vector<256x128xbf16>, vector<8x128xf32> -> vector<8x128xf32>
    %c0_63 = arith.constant 0 : index
    %c0_64 = arith.constant 0 : index
    %61 = vector.load %arg9[%c0_63, %c0_64] : memref<1x128xf32, #tpu.memory_space<vmem>>, vector<1x128xf32>
    %62 = vector.broadcast %61 : vector<1x128xf32> to vector<8x128xf32>
    %63 = arith.addf %60, %62 : vector<8x128xf32>
    %64 = tpu.iota {dimensions = array<i32: 1>} : vector<8x128xi32>
    %c5_i32 = arith.constant 5 : i32
    %65 = vector.broadcast %c5_i32 : i32 to vector<8x128xi32>
    %66 = arith.cmpi slt, %64, %65 : vector<8x128xi32>
    %cst_65 = arith.constant -1.000000e+30 : f32
    %67 = vector.broadcast %cst_65 : f32 to vector<8x128xf32>
    %68 = arith.select %66, %63, %67 : vector<8x128xi1>, vector<8x128xf32>
    %cst_66 = arith.constant dense<0xFF800000> : vector<8xf32>
    %69 = vector.multi_reduction <maximumf>, %68, %cst_66 [1] : vector<8x128xf32> to vector<8xf32>
    %70 = vector.shape_cast %69 : vector<8xf32> to vector<8x1xf32>
    %71 = vector.broadcast %70 : vector<8x1xf32> to vector<8x128xf32>
    %72 = arith.subf %68, %71 : vector<8x128xf32>
    %73 = math.exp %72 : vector<8x128xf32>
    %cst_67 = arith.constant dense<0.000000e+00> : vector<8xf32>
    %74 = vector.multi_reduction <add>, %73, %cst_67 [1] : vector<8x128xf32> to vector<8xf32>
    %75 = vector.shape_cast %74 : vector<8xf32> to vector<8x1xf32>
    %76 = math.log %75 : vector<8x1xf32>
    %77 = arith.addf %70, %76 : vector<8x1xf32>
    %c0_68 = arith.constant 0 : index
    %c0_69 = arith.constant 0 : index
    %78 = vector.load %arg4[%c0_68, %c0_69] : memref<8x1xi32, #tpu.memory_space<vmem>>, vector<8x1xi32>
    %79 = vector.broadcast %78 : vector<8x1xi32> to vector<8x128xi32>
    %80 = arith.cmpi eq, %64, %79 : vector<8x128xi32>
    %81 = arith.extui %80 : vector<8x128xi1> to vector<8x128xi32>
    %82 = arith.sitofp %81 : vector<8x128xi32> to vector<8x128xf32>
    %83 = arith.mulf %63, %82 : vector<8x128xf32>
    %cst_70 = arith.constant dense<0.000000e+00> : vector<8xf32>
    %84 = vector.multi_reduction <add>, %83, %cst_70 [1] : vector<8x128xf32> to vector<8xf32>
    %85 = vector.shape_cast %84 : vector<8xf32> to vector<8x1xf32>
    %86 = tpu.iota {dimensions = array<i32: 0>} : vector<8x1xi32>
    %c2_i32 = arith.constant 2 : i32
    %87 = vector.broadcast %c2_i32 : i32 to vector<8x1xi32>
    %88 = arith.cmpi slt, %86, %87 : vector<8x1xi32>
    %89 = arith.subf %77, %85 : vector<8x1xf32>
    %cst_71 = arith.constant 0.000000e+00 : f32
    %90 = vector.broadcast %cst_71 : f32 to vector<8x1xf32>
    %91 = arith.select %88, %89, %90 : vector<8x1xi1>, vector<8x1xf32>
    %92 = vector.shape_cast %91 : vector<8x1xf32> to vector<1x8x1xf32>
    %cst_72 = arith.constant dense<0.000000e+00> : vector<1xf32>
    %93 = vector.multi_reduction <add>, %92, %cst_72 [1, 2] : vector<1x8x1xf32> to vector<1xf32>
    %94 = vector.shape_cast %93 : vector<1xf32> to vector<1x1x1xf32>
    %95 = vector.extract %94[0, 0, 0] : f32 from vector<1x1x1xf32>
    %cst_73 = arith.constant 5.000000e-01 : f32
    %96 = arith.mulf %95, %cst_73 : f32
    %c0_74 = arith.constant 0 : index
    %c0_75 = arith.constant 0 : index
    %97 = vector.load %arg10[%c0_74, %c0_75] : memref<8x128xf32, #tpu.memory_space<vmem>>, vector<8x128xf32>
    tpu.vector_store %arg10[%c0_74, %c0_75], %63 {strides = array<i32>} : memref<8x128xf32, #tpu.memory_space<vmem>>, vector<8x128xf32>,
    %98 = vector.broadcast %96 : f32 to vector<1x128xf32>
    %c7 = arith.constant 7 : index
    %c0_76 = arith.constant 0 : index
    %99 = vector.load %arg10[%c7, %c0_76] : memref<8x128xf32, #tpu.memory_space<vmem>>, vector<1x128xf32>
    tpu.vector_store %arg10[%c7, %c0_76], %98 {strides = array<i32>} : memref<8x128xf32, #tpu.memory_space<vmem>>, vector<1x128xf32>,
    return
  }
  func.func @transform_1(%arg0: i32, %arg1: memref<2xi32, #tpu.memory_space<smem>>, %arg2: memref<2xi32, #tpu.memory_space<smem>>) -> (i32, i32) {
    %c0_i32 = arith.constant 0 : i32
    %c0_i32_0 = arith.constant 0 : i32
    %c0_i32_1 = arith.constant 0 : i32
    return %c0_i32, %c0_i32_0 : i32, i32
  }
  func.func @transform_2(%arg0: i32, %arg1: memref<2xi32, #tpu.memory_space<smem>>, %arg2: memref<2xi32, #tpu.memory_space<smem>>) -> (i32, i32) {
    %c0_i32 = arith.constant 0 : i32
    %c0_i32_0 = arith.constant 0 : i32
    %c0_i32_1 = arith.constant 0 : i32
    return %c0_i32, %c0_i32_0 : i32, i32
  }
  func.func @transform_3(%arg0: i32, %arg1: memref<2xi32, #tpu.memory_space<smem>>, %arg2: memref<2xi32, #tpu.memory_space<smem>>) -> (i32, i32) {
    %c0_i32 = arith.constant 0 : i32
    %c0_i32_0 = arith.constant 0 : i32
    %c0_i32_1 = arith.constant 0 : i32
    return %c0_i32, %c0_i32_0 : i32, i32
  }
  func.func @transform_4(%arg0: i32, %arg1: memref<2xi32, #tpu.memory_space<smem>>, %arg2: memref<2xi32, #tpu.memory_space<smem>>) -> (i32, i32) {
    %c0_i32 = arith.constant 0 : i32
    %c0_i32_0 = arith.constant 0 : i32
    %c0_i32_1 = arith.constant 0 : i32
    return %c0_i32, %c0_i32_0 : i32, i32
  }
  func.func @transform_5(%arg0: i32, %arg1: memref<2xi32, #tpu.memory_space<smem>>, %arg2: memref<2xi32, #tpu.memory_space<smem>>) -> (i32, i32) {
    %c0_i32 = arith.constant 0 : i32
    %c0_i32_0 = arith.constant 0 : i32
    %c0_i32_1 = arith.constant 0 : i32
    return %c0_i32, %c0_i32_0 : i32, i32
  }
  func.func @transform_6(%arg0: i32, %arg1: memref<2xi32, #tpu.memory_space<smem>>, %arg2: memref<2xi32, #tpu.memory_space<smem>>) -> (i32, i32) {
    %c0_i32 = arith.constant 0 : i32
    %c0_i32_0 = arith.constant 0 : i32
    %c0_i32_1 = arith.constant 0 : i32
    return %c0_i32, %c0_i32_0 : i32, i32
  }
  func.func @transform_7(%arg0: i32, %arg1: memref<2xi32, #tpu.memory_space<smem>>, %arg2: memref<2xi32, #tpu.memory_space<smem>>) -> (i32, i32) {
    %c0_i32 = arith.constant 0 : i32
    %c0_i32_0 = arith.constant 0 : i32
    %c0_i32_1 = arith.constant 0 : i32
    return %c0_i32, %c0_i32_0 : i32, i32
  }
}

</mosaic_0001>

<bundles_post_ra>
// kernel: relation_extraction_head.1
= control target key start
LH: loop header
LB: loop body
LE: loop exit
PB: predicated region body
PF: predicated region fallthrough
CT: control target
= control target key end

     0   :  { %s1286_s0 = inlined_call_operand.vmem [shape: s32[2], index: 0, kind: input, shape index: {}]   ;;  %s1287_s2 = inlined_call_operand.vmem [shape: f32[16,128], index: 2, kind: input, shape index: {}]   ;;  %s1288_s3 = inlined_call_operand.vmem [shape: s32[8,1], index: 3, kind: input, shape index: {}]   ;;  %s1289_s4 = inlined_call_operand.hbm [shape: bf16[128,256], index: 4, kind: input, shape index: {}]   ;;  %s1290_s5 = inlined_call_operand.hbm [shape: bf16[128,256], index: 5, kind: input, shape index: {}]   ;;  %s1291_s6 = inlined_call_operand.vmem [shape: f32[1,256], index: 6, kind: input, shape index: {}]   ;;  %s1292_s7 = inlined_call_operand.hbm [shape: bf16[256,128], index: 7, kind: input, shape index: {}]   ;;  %s1293_s8 = inlined_call_operand.vmem [shape: f32[1,128], index: 8, kind: input, shape index: {}]   ;;  %s1294_s9 = inlined_call_operand.vmem [shape: f32[8,128], index: 9, kind: output, shape index: {}]   ;;  %s1295_s1 = inlined_call_operand.vmem [shape: s32[2], index: 1, kind: input, shape index: {}]  }
   0x1   :  { %s14_s11 = sshll.u32 %s1286_s0, 4  ;;  %s18_s14 = sshll.u32 %s1295_s1, 4  ;;  %s15_s11 = int_to_ptr.vmem [resolvable:$true] %s14_s11  ;;  %s19_s14 = int_to_ptr.vmem [resolvable:$true] %s18_s14 }
   0x2   :  { %s1042_s15 = scalar_lea.vmem %s15_s11, 16  ;;  %p1047_p1 = scmp.lt.s32.totalorder %s15_s11, %s15_s11 }
   0x3   :  { %p1043_p0 = scmp.ne.s32.totalorder %s15_s11, %s1042_s15  ;;  %p1048_p2 = scmp.lt.s32.totalorder %s1042_s15, %s1042_s15 }
   0x5   :  { %p1049_p3 = por %p1048_p2, %p1047_p1 }
   0x7   :  { %p1050_p4 = pnand %p1049_p3, %p1043_p0 }
   0x9   :  { %1053 = shalt.err (!%p1050_p4)  }
   0xa   :  { %s1146_s16 = smov [#allocation6]   ;;  %s1054_s17 = scalar_lea.vmem %s19_s14, 16 }
   0xb   :  { %17 = dma.vmem_to_smem %s15_s11, 16, %s1146_s16, [#allocation5] }
   0xc   :  { %p1055_p5 = scmp.ne.s32.totalorder %s19_s14, %s1054_s17  ;;  %p1059_p6 = scmp.lt.s32.totalorder %s19_s14, %s19_s14 }
   0xd   :  { %p1060_p7 = scmp.lt.s32.totalorder %s1054_s17, %s1054_s17 }
   0xf   :  { %p1061_p8 = por %p1060_p7, %p1059_p6 }
  0x11   :  { %p1062_p9 = pnand %p1061_p8, %p1055_p5 }
  0x13   :  { %1065 = shalt.err (!%p1062_p9)  }
  0x14   :  { %s1147_s0 = smov [#allocation7]  }
  0x15   :  { %21 = dma.vmem_to_smem %s19_s14, 16, %s1147_s0, [#allocation5] }
  0x16   :  { %1132 = dma.done.wait [#allocation5], 32 }
  0x17   :  { %1133 = vsyncadd [#allocation5], 4294967264 }
  0x18   :  { %23 = sfence }
  0x19   :  { %24 = vsyncpa [#allocation9], 0 }
  0x1a   :  { %25 = vsyncpa [#allocation11], 0  ;;  %s1148_s1 = smov [#allocation10]   ;;  %s1149_s19 = smov [#allocation8]  }
  0x1b   :  { %s45_s18 = sshll.u32 %s1148_s1, 4  ;;  %s33_s20 = sshll.u32 %s1149_s19, 4  ;;  %s46_s18 = int_to_ptr.vmem [resolvable:$true] %s45_s18  ;;  %s1213_s20 = int_to_ptr.vmem [resolvable:$true] %s33_s20 }
  0x1c   :  { %s1066_s23 = scalar_lea.hbm %s1290_s5, 2048 }
  0x1d   :  { %p1067_p10 = scmp.ne.s32.totalorder %s1290_s5, %s1066_s23  ;;  %p1070_p11 = scmp.lt.u32.totalorder %s1066_s23, %s1290_s5 }
  0x1f   :  { %p1072_p12 = pnand %p1070_p11, %p1067_p10 }
  0x21   :  { %1075 = shalt.err (!%p1072_p12)
}
  0x22   :  { %s1076_s28 = scalar_lea.vmem %s46_s18, 2048  ;;  %p1081_p0 = scmp.lt.s32.totalorder %s46_s18, %s46_s18 }
  0x23   :  { %p1077_p13 = scmp.ne.s32.totalorder %s46_s18, %s1076_s28  ;;  %p1082_p1 = scmp.lt.s32.totalorder %s1076_s28, %s1076_s28 }
  0x25   :  { %p1083_p2 = por %p1082_p1, %p1081_p0 }
  0x27   :  { %p1084_p3 = pnand %p1083_p2, %p1077_p13 }
  0x29   :  { %1087 = shalt.err (!%p1084_p3)
}
  0x2a   :  { %s1150_s29 = smov 128   ;;  %s1151_s30 = smov 8  }
  0x2b   :  { %51 = dma.hbm_to_vmem [thread:$0]  %s1290_s5, 2048, %s46_s18, [#allocation11], %s1150_s29, %s1150_s29, %s1151_s30  }
  0x2c   :  { %s1088_s14 = scalar_lea.hbm %s1289_s4, 2048 }
  0x2d   :  { %p1089_p4 = scmp.ne.s32.totalorder %s1289_s4, %s1088_s14  ;;  %p1092_p5 = scmp.lt.u32.totalorder %s1088_s14, %s1289_s4 }
  0x2f   :  { %p1094_p6 = pnand %p1092_p5, %p1089_p4 }
  0x31   :  { %1097 = shalt.err (!%p1094_p6)
}
  0x32   :  { %s1098_s1 = scalar_lea.vmem %s1213_s20, 2048  ;;  %p1103_p8 = scmp.lt.s32.totalorder %s1213_s20, %s1213_s20 }
  0x33   :  { %p1099_p7 = scmp.ne.s32.totalorder %s1213_s20, %s1098_s1  ;;  %p1104_p9 = scmp.lt.s32.totalorder %s1098_s1, %s1098_s1 }
  0x35   :  { %p1105_p10 = por %p1104_p9, %p1103_p8 }
  0x37   :  { %p1106_p11 = pnand %p1105_p10, %p1099_p7 }
  0x39   :  { %1109 = shalt.err (!%p1106_p11)
}
  0x3a   :  { %39 = dma.hbm_to_vmem [thread:$0]  %s1289_s4, 2048, %s1213_s20, [#allocation9], %s1150_s29, %s1150_s29, %s1151_s30  }
  0x3b   :  { %s1152_s19 = smov [#allocation12]   ;;  %s1110_s24 = scalar_lea.hbm %s1292_s7, 2048 }
  0x3c   :  { %s59_s21 = sshll.u32 %s1152_s19, 4  ;;  %p1111_p12 = scmp.ne.s32.totalorder %s1292_s7, %s1110_s24  ;;  %s60_s21 = int_to_ptr.vmem [resolvable:$true] %s59_s21 }
  0x3d   :  { %p1114_p13 = scmp.lt.u32.totalorder %s1110_s24, %s1292_s7 }
  0x3f   :  { %p1116_p0 = pnand %p1114_p13, %p1111_p12 }
  0x41   :  { %1119 = shalt.err (!%p1116_p0)
}
  0x42   :  { %s1120_s10 = scalar_lea.vmem %s60_s21, 2048  ;;  %p1125_p2 = scmp.lt.s32.totalorder %s60_s21, %s60_s21 }
  0x43   :  { %p1121_p1 = scmp.ne.s32.totalorder %s60_s21, %s1120_s10  ;;  %p1126_p3 = scmp.lt.s32.totalorder %s1120_s10, %s1120_s10 }
  0x45   :  { %p1127_p4 = por %p1126_p3, %p1125_p2 }
  0x47   :  { %p1128_p5 = pnand %p1127_p4, %p1121_p1 }
  0x49   :  { %1131 = shalt.err (!%p1128_p5)
}
  0x4a   :  { %s1153_s4 = smov 64   ;;  %s1154_s20 = smov 4  }
  0x4b   :  { %65 = dma.hbm_to_vmem [thread:$0]  %s1292_s7, 2048, %s60_s21, [#allocation11], %s1153_s4, %s1153_s4, %s1154_s20  }
  0x4c   :  { %1134 = dma.done.wait [#allocation9], 2048  }
  0x4d   :  { %1135 = vsyncadd [#allocation9], 4294965248 }
  0x4e   :  { %1136 = dma.done.wait [#allocation11], 4096  }
  0x4f   :  { %1137 = vsyncadd [#allocation11], 4294963200  ;;  %s81_s11 = sld [smem:[#allocation7]]  ;;  %v1155_v0 = vmov 0.0  }
  0x50   :  { %78 = vst [vmem:[#allocation2 + $0x2] sm:$0x3f] %v1155_v0  ;;  %79 = vst [vmem:[#allocation3 + $0x2] sm:$0x3f] %v1155_v0  ;;  %s80_s12 = sld [smem:[#allocation6]] }
  0x56   :  { %s82_s15 = scalar_lea.vmem %s1287_s2, %s80_s12 }
  0x57   :  { %v100_v1 = vld [vmem:[%s82_s15] sm:$0x1] }
  0x58   :  { %101 = vst [vmem:[#allocation2] sm:$0x1] %v100_v1 }
  0x59   :  { %126 = vsyncadd [#allocation4], 16  ;;  %s127_s17 = scalar_lea.vmem %s1287_s2, %s81_s11 }
  0x5a   :  { %v146_v2 = vld [vmem:[%s127_s17] sm:$0x1] }
  0x5b   :  { %147 = vst [vmem:[#allocation3] sm:$0x1] %v146_v2 }
  0x5c   :  { %172 = vsyncadd [#allocation4 + $0x2], 16  ;;  %s878_s0 = sld [smem:[#allocation6 + $0x1]] }
  0x5d   :  { %s879_s1 = sld [smem:[#allocation7 + $0x1]] }
  0x62   :  { %s834_s19 = scalar_lea.vmem %s1287_s2, %s878_s0 }
  0x63   :  { %v881_v3 = vld [vmem:[%s834_s19 + $0x8] sm:$0x1] }
  0x64   :  { %198 = vst [vmem:[#allocation2 + $0x1] sm:$0x1] %v881_v3 }
  0x65   :  { %223 = vsyncadd [#allocation4 + $0x1], 16  ;;  %s840_s23 = scalar_lea.vmem %s1287_s2, %s879_s1 }
  0x66   :  { %v883_v4 = vld [vmem:[%s840_s23 + $0x8] sm:$0x1] }
  0x67   :  { %245 = vst [vmem:[#allocation3 + $0x1] sm:$0x1] %v883_v4 }
  0x68   :  { %270 = vsyncadd [#allocation4 + $0x3], 16 }
  0x69   :  { %1138 = dma.done.wait [#allocation4], 16 }
  0x6a   :  { %1139 = vsyncadd [#allocation4], 4294967280 }
  0x6b   :  { %1140 = dma.done.wait [#allocation4 + $0x2], 16 }
  0x6c   :  { %1141 = vsyncadd [#allocation4 + $0x2], 4294967280 }
  0x6d   :  { %1142 = dma.done.wait [#allocation4 + $0x1], 16 }
  0x6e   :  { %1143 = vsyncadd [#allocation4 + $0x1], 4294967280 }
  0x6f   :  { %1144 = dma.done.wait [#allocation4 + $0x3], 16 }
  0x70   :  { %1145 = vsyncadd [#allocation4 + $0x3], 4294967280  ;;  %v1156_v5 = vmov 0   ;;  %v974_v6 = vld [vmem:[#allocation10 + $0x4] ss:$8 sps:$4 sm:$0xff]   ;;  %v298_v38 = vld [vmem:[#allocation3] sm:$0xff]  ;;  %v560_v58 = vlaneseq }
  0x71   :  { %428 = vmatprep.mubr.bf16.mxu0 %v1156_v5  ;;  %549 = vmatprep.mubr.bf16.mxu1 %v1156_v5  ;;  %v976_v7 = vld [vmem:[#allocation8 + $0x4] ss:$8 sps:$4 sm:$0xff]   ;;  %v978_v8 = vld [vmem:[#allocation10] ss:$8 sps:$4 sm:$0xff]   ;;  %v980_v10 = vld [vmem:[#allocation10 + $0x14] ss:$8 sps:$4 sm:$0xff]   ;;  %v299_v41 = vpack.c.bf16 %v298_v38, %v298_v38 }
  0x72   :  { %973 = vset.pattern.permute.xlu0 %v1156_v5  ;;  %396 = vmatprep.subr.bf16.mxu0 %v974_v6  ;;  %v979_v9 = vld [vmem:[#allocation8] ss:$8 sps:$4 sm:$0xff]   ;;  %v982_v11 = vld [vmem:[#allocation8 + $0x14] ss:$8 sps:$4 sm:$0xff]   ;;  %v984_v12 = vld [vmem:[#allocation10 + $0x10] ss:$8 sps:$4 sm:$0xff]  }
  0x73   :  { %517 = vmatprep.subr.bf16.mxu1 %v976_v7  ;;  %397 = vmatpush1.bf16.msra.mxu0 %v978_v8  ;;  %v985_v13 = vld [vmem:[#allocation8 + $0x10] ss:$8 sps:$4 sm:$0xff]   ;;  %v986_v14 = vld [vmem:[#allocation10 + $0x24] ss:$8 sps:$4 sm:$0xff]   ;;  %v990_v16 = vld [vmem:[#allocation10 + $0x20] ss:$8 sps:$4 sm:$0xff]  }
  0x74   :  { %518 = vmatpush1.bf16.msra.mxu1 %v979_v9  ;;  %398 = vmatprep.subr.bf16.mxu0 %v980_v10  ;;  %v988_v15 = vld [vmem:[#allocation8 + $0x24] ss:$8 sps:$4 sm:$0xff]   ;;  %v991_v17 = vld [vmem:[#allocation8 + $0x20] ss:$8 sps:$4 sm:$0xff]   ;;  %v992_v18 = vld [vmem:[#allocation10 + $0x34] ss:$8 sps:$4 sm:$0xff]  }
  0x75   :  { %519 = vmatprep.subr.bf16.mxu1 %v982_v11  ;;  %v994_v19 = vld [vmem:[#allocation8 + $0x34] ss:$8 sps:$4 sm:$0xff]   ;;  %v996_v20 = vld [vmem:[#allocation10 + $0x30] ss:$8 sps:$4 sm:$0xff]   ;;  %v998_v22 = vld [vmem:[#allocation10 + $0x44] ss:$8 sps:$4 sm:$0xff]  }
  0x76   :  { %v997_v21 = vld [vmem:[#allocation8 + $0x30] ss:$8 sps:$4 sm:$0xff]   ;;  %v1000_v23 = vld [vmem:[#allocation8 + $0x44] ss:$8 sps:$4 sm:$0xff]   ;;  %v1002_v24 = vld [vmem:[#allocation10 + $0x40] ss:$8 sps:$4 sm:$0xff]  }
  0x77   :  { %399 = vmatpush1.bf16.msra.mxu0 %v984_v12  ;;  %v1003_v25 = vld [vmem:[#allocation8 + $0x40] ss:$8 sps:$4 sm:$0xff]   ;;  %v1004_v26 = vld [vmem:[#allocation10 + $0x54] ss:$8 sps:$4 sm:$0xff]   ;;  %v1008_v28 = vld [vmem:[#allocation10 + $0x50] ss:$8 sps:$4 sm:$0xff]  }
  0x78   :  { %520 = vmatpush1.bf16.msra.mxu1 %v985_v13  ;;  %400 = vmatprep.subr.bf16.mxu0 %v986_v14  ;;  %v1006_v27 = vld [vmem:[#allocation8 + $0x54] ss:$8 sps:$4 sm:$0xff]   ;;  %v1009_v29 = vld [vmem:[#allocation8 + $0x50] ss:$8 sps:$4 sm:$0xff]   ;;  %v1010_v30 = vld [vmem:[#allocation10 + $0x64] ss:$8 sps:$4 sm:$0xff]  }
  0x79   :  { %521 = vmatprep.subr.bf16.mxu1 %v988_v15  ;;  %v1012_v31 = vld [vmem:[#allocation8 + $0x64] ss:$8 sps:$4 sm:$0xff]   ;;  %v1014_v32 = vld [vmem:[#allocation10 + $0x60] ss:$8 sps:$4 sm:$0xff]   ;;  %v1016_v34 = vld [vmem:[#allocation10 + $0x74] ss:$8 sps:$4 sm:$0xff]  }
  0x7a   :  { %v1015_v33 = vld [vmem:[#allocation8 + $0x60] ss:$8 sps:$4 sm:$0xff]   ;;  %v1018_v35 = vld [vmem:[#allocation8 + $0x74] ss:$8 sps:$4 sm:$0xff]   ;;  %v1020_v36 = vld [vmem:[#allocation10 + $0x70] ss:$8 sps:$4 sm:$0xff]  }
  0x7b   :  { %401 = vmatpush1.bf16.msra.mxu0 %v990_v16  ;;  %v1021_v37 = vld [vmem:[#allocation8 + $0x70] ss:$8 sps:$4 sm:$0xff]   ;;  %v1022_v40 = vld [vmem:[#allocation12 + $0x40] sm:$0xff]   ;;  %v1024_v44 = vld [vmem:[#allocation12 + $0x48] sm:$0xff]   ;;  %v561_v59 = vshrl.u32 %v560_v58, 7  ;;  %vm780_vm3 = vcmask 7168  }
  0x7c   :  { %522 = vmatpush1.bf16.msra.mxu1 %v991_v17  ;;  %402 = vmatprep.subr.bf16.mxu0 %v992_v18  ;;  %v280_v39 = vld [vmem:[#allocation2] sm:$0xff]  ;;  %v1023_v43 = vld [vmem:[#allocation12] sm:$0xff]   ;;  %v1025_v45 = vld [vmem:[#allocation12 + $0x8] sm:$0xff]   ;;  %v752_v18 = vand.u32 127, %v560_v58 }
  0x7d   :  { %523 = vmatprep.subr.bf16.mxu1 %v994_v19  ;;  %v281_v42 = vpack.c.bf16 %v280_v39, %v280_v39  ;;  %v1026_v46 = vld [vmem:[#allocation12 + $0x50] sm:$0xff]   ;;  %v1028_v48 = vld [vmem:[#allocation12 + $0x58] sm:$0xff]   ;;  %v1030_v50 = vld [vmem:[#allocation12 + $0x60] sm:$0xff]   ;;  %v562_v60 = vsub.s32 0, %v561_v59  ;;  %v566_v62 = vsub.s32 1, %v561_v59  ;;  %vm777_vm2 = vcmp.lt.s32.totalorder %v561_v59, 2 }
  0x7e   :  { %v1027_v47 = vld [vmem:[#allocation12 + $0x10] sm:$0xff]   ;;  %v1029_v49 = vld [vmem:[#allocation12 + $0x18] sm:$0xff]   ;;  %v1031_v51 = vld [vmem:[#allocation12 + $0x20] sm:$0xff]   ;;  %vm753_vm0 = vcmp.lt.s32.totalorder %v752_v18, 5 }
  0x7f   :  { %403 = vmatpush1.bf16.msra.mxu0 %v996_v20  ;;  %v1032_v52 = vld [vmem:[#allocation12 + $0x68] sm:$0xff]   ;;  %v1034_v54 = vld [vmem:[#allocation12 + $0x70] sm:$0xff]   ;;  %v1036_v56 = vld [vmem:[#allocation12 + $0x78] sm:$0xff]  }
  0x80   :  { %524 = vmatpush1.bf16.msra.mxu1 %v997_v21  ;;  %404 = vmatprep.subr.bf16.mxu0 %v998_v22  ;;  %v1033_v53 = vld [vmem:[#allocation12 + $0x28] sm:$0xff]   ;;  %v1035_v55 = vld [vmem:[#allocation12 + $0x30] sm:$0xff]   ;;  %v1037_v57 = vld [vmem:[#allocation12 + $0x38] sm:$0xff]  }
  0x81   :  { %525 = vmatprep.subr.bf16.mxu1 %v1000_v23  ;;  %v558_v61 = vld [vmem:[%s1291_s6] sm:$0x3] }
  0x82   :  { %v563_v63 = vrot.slane %v558_v61, %v562_v60  ;;  %v567_v3 = vrot.slane %v558_v61, %v566_v62  ;;  %v916_v20 = vld [vmem:[%s1293_s8] ss:$0 sm:$0xff] }
  0x83   :  { %405 = vmatpush1.bf16.msra.mxu0 %v1002_v24 }
  0x84   :  { %526 = vmatpush1.bf16.msra.mxu1 %v1003_v25  ;;  %406 = vmatprep.subr.bf16.mxu0 %v1004_v26 }
  0x85   :  { %527 = vmatprep.subr.bf16.mxu1 %v1006_v27  ;;  %v765_v27 = vld [vmem:[%s1288_s3] sm:$0xff] }
  0x87   :  { %407 = vmatpush1.bf16.msra.mxu0 %v1008_v28 }
  0x88   :  { %528 = vmatpush1.bf16.msra.mxu1 %v1009_v29  ;;  %408 = vmatprep.subr.bf16.mxu0 %v1010_v30 }
  0x89   :  { %529 = vmatprep.subr.bf16.mxu1 %v1012_v31 }
  0x8b   :  { %409 = vmatpush1.bf16.msra.mxu0 %v1014_v32 }
  0x8c   :  { %530 = vmatpush1.bf16.msra.mxu1 %v1015_v33  ;;  %410 = vmatprep.subr.bf16.mxu0 %v1016_v34 }
  0x8d   :  { %531 = vmatprep.subr.bf16.mxu1 %v1018_v35 }
  0x8f   :  { %411 = vmatpush1.bf16.msra.mxu0 %v1020_v36 }
  0x90   :  { %532 = vmatpush1.bf16.msra.mxu1 %v1021_v37  ;;  %938 = vmatprep.subr.bf16.mxu0 %v1022_v40 }
  0x92   :  { %429 = vmatmul.mubr.bf16.vlgmr.msra.gmra.mrb[0].mxu0 %v299_v41 }
  0x93   :  { %550 = vmatmul.mubr.bf16.vlgmr.msra.gmra.mrb[0].mxu1 %v281_v42  ;;  %939 = vmatpush3.bf16.msra.mxu0 %v1023_v43 }
  0x94   :  { %940 = vmatprep.subr.bf16.mxu0 %v1024_v44 }
  0x97   :  { %941 = vmatpush3.bf16.msra.mxu0 %v1025_v45 }
  0x98   :  { %942 = vmatprep.subr.bf16.mxu0 %v1026_v46 }
  0x9b   :  { %943 = vmatpush3.bf16.msra.mxu0 %v1027_v47 }
  0x9c   :  { %944 = vmatprep.subr.bf16.mxu0 %v1028_v48 }
  0x9f   :  { %945 = vmatpush3.bf16.msra.mxu0 %v1029_v49 }
  0xa0   :  { %946 = vmatprep.subr.bf16.mxu0 %v1030_v50 }
  0xa3   :  { %947 = vmatpush3.bf16.msra.mxu0 %v1031_v51 }
  0xa4   :  { %948 = vmatprep.subr.bf16.mxu0 %v1032_v52 }
  0xa7   :  { %949 = vmatpush3.bf16.msra.mxu0 %v1033_v53 }
  0xa8   :  { %950 = vmatprep.subr.bf16.mxu0 %v1034_v54 }
  0xab   :  { %951 = vmatpush3.bf16.msra.mxu0 %v1035_v55 }
  0xac   :  { %952 = vmatprep.subr.bf16.mxu0 %v1036_v56 }
  0xaf   :  { %953 = vmatpush3.bf16.msra.mxu0 %v1037_v57 }
 0x165   :  { %v430_v1 = vpop.f32.mrb[0].mxu0 }
 0x166   :  { %v551_v2 = vpop.f32.mrb[0].mxu1  ;;  %v432_v5 = vpop.f32.mrb[1].mxu0 }
 0x167   :  { %v552_v4 = vadd.f32 %v551_v2, %v430_v1  ;;  %v553_v6 = vpop.f32.mrb[1].mxu1  ;;  %v434_v8 = vpop.f32.mrb[2].mxu0 }
 0x168   :  { %v554_v7 = vadd.f32 %v553_v6, %v432_v5  ;;  %v555_v9 = vpop.f32.mrb[2].mxu1  ;;  %v435_v11 = vpop.f32.mrb[3].mxu0 }
 0x169   :  { %v570_v10 = vadd.f32 %v563_v63, %v552_v4  ;;  %v556_v12 = vpop.f32.mrb[3].mxu1 }
 0x16a   :  { %v571_v13 = vadd.f32 %v567_v3, %v554_v7 }
 0x16b   :  { %v572_v14 = vmax.f32 %v570_v10, 0.0 }
 0x16c   :  { %v573_v15 = vmax.f32 %v571_v13, 0.0 }
 0x16d   :  { %v574_v17 = vpack.c.bf16 %v572_v14, %v572_v14 }
 0x16e   :  { %v575_v16 = vpack.c.bf16 %v573_v15, %v573_v15 }
 0x170   :  { %743 = vmatprep.mubr.bf16.mxu0 %v575_v16 }
 0x171   :  { %744 = vmatmul.mubr.bf16.vlgmr.msra.gmra.mrb[4].mxu0 %v574_v17 }
 0x244   :  { %v954_v19 = vpop.f32.mrb[4].mxu0 }
 0x245   :  { %v955_v21 = vpop.f32.mrb[5].mxu0 }
 0x246   :  { %v956_v22 = vadd.f32 %v955_v21, %v954_v19  ;;  %v957_v23 = vpop.f32.mrb[6].mxu0 }
 0x247   :  { %v958_v24 = vpop.f32.mrb[7].mxu0 }
 0x248   :  { %v746_v25 = vadd.f32 %v956_v22, %v916_v20 }
 0x24a   :  { %792 = vst [vmem:[%s1294_s9] sm:$0xff] %v746_v25  ;;  %v754_v26 = vsel %vm753_vm0, %v746_v25, -1e+30 }
 0x24b   :  { %755 = vmax.xlane.f32.xlu0 %v754_v26 }
 0x261   :  { %767 = vperm.xlu0 %973, %v765_v27  }
 0x2d8   :  { %v756_v28 = vpop.xlane.xlu0 %755 }
 0x2d9   :  { %v757_v29 = vsub.f32 %v754_v26, %v756_v28 }
 0x2db   :  { %v758_v30 = vmul.f32 1.442695, %v757_v29 }
 0x2dd   :  { %1038 = vpow2.f32 %v758_v30 }
 0x2e0   :  { %v768_v31 = vpop.permute.xlu0 %767 }
 0x2e1   :  { %vm769_vm1 = vcmp.eq.s32.totalorder %v752_v18, %v768_v31 }
 0x2e2   :  { %v933_v33 = vsel %vm769_vm1, 1.0, %v1155_v0 }
 0x2e3   :  { %v772_v34 = vmul.f32 %v933_v33, %v746_v25 }
 0x2e7   :  { %v1039_v32 = vpop.eup %1038 }
 0x2e8   :  { %760 = vadd.xlane.f32.xlu1 %v1039_v32 }
 0x2ec   :  { %773 = vadd.xlane.f32.xlu1 %v772_v34 }
 0x375   :  { %v761_v35 = vpop.xlane.xlu1 %760 }
 0x376   :  { %1040 = vlog2.f32 %v761_v35 }
 0x379   :  { %v774_v39 = vpop.xlane.xlu1 %773 }
 0x380   :  { %v1041_v36 = vpop.eup %1040 }
 0x381   :  { %v763_v37 = vmul.f32 0.6931472, %v1041_v36 }
 0x383   :  { %v764_v38 = vadd.f32 %v763_v37, %v756_v28 }
 0x385   :  { %v778_v40 = vsub.f32 %v764_v38, %v774_v39 }
 0x387   :  { %v779_v41 = vsel %vm777_vm2, %v778_v40, 0.0 }
 0x388   :  { %v781_v42 = vsel %vm780_vm3, %v779_v41, 0.0 }
 0x389   :  { %782 = vadd.xlane.f32.xlu1 %v781_v42 }
 0x416   :  { %v783_v43 = vpop.xlane.xlu1 %782 }
 0x417   :  { %v784_v44 = vrot.slane %v783_v43, 4 }
 0x419   :  { %v785_v45 = vadd.f32 %v784_v44, %v783_v43 }
 0x41b   :  { %v786_v46 = vrot.slane %v785_v45, 2 }
 0x41d   :  { %v787_v0 = vadd.f32 %v786_v46, %v785_v45 }
 0x41f   :  { %v788_v47 = vrot.slane %v787_v0, 1 }
 0x421   :  { %v789_v48 = vadd.f32 %v788_v47, %v787_v0 }
 0x423   :  { %960 = vpush %v789_v48 }
 0x454   :  { %s961_s3 = spop %960 }
 0x455   :  { %s791_s8 = smul.f32 0.5, %s961_s3 }
 0x457   :  { %v793_v49 = vstv %s791_s8 }
 0x458   :  { %794 = vst [vmem:[%s1294_s9 + $0x7] sm:$0x1] %v793_v49 }
 0x459   :  { %799 = vsyncpa [#allocation9], 1 }
 0x45a   :  { %800 = vsyncpa [#allocation11], 1 }
 0x45b   :  { %801 = vsyncmov [#allocation4] }
 0x45e   :  { %s802_s29 = vpop.sfrf %801 }
 0x45f   :  { %p934_p6 = scmp.ne.s32.totalorder %s802_s29, 0 }
 0x461   :  { %806 = shalt.err (%p934_p6)  }
 0x462   :  { %808 = vsyncmov [#allocation4 + $0x1] }
 0x465   :  { %s809_s30 = vpop.sfrf %808 }
 0x466   :  { %p935_p7 = scmp.ne.s32.totalorder %s809_s30, 0 }
 0x468   :  { %813 = shalt.err (%p935_p7)  }
 0x469   :  { %815 = vsyncmov [#allocation4 + $0x2] }
 0x46c   :  { %s816_s11 = vpop.sfrf %815 }
 0x46d   :  { %p936_p8 = scmp.ne.s32.totalorder %s816_s11, 0 }
 0x46f   :  { %820 = shalt.err (%p936_p8)  }
 0x470   :  { %822 = vsyncmov [#allocation4 + $0x3] }
 0x473   :  { %s823_s12 = vpop.sfrf %822 }
 0x474   :  { %p937_p9 = scmp.ne.s32.totalorder %s823_s12, 0 }
 0x476   :  { %827 = shalt.err (%p937_p9)  }

</bundles_post_ra>
